<compile_context>
chip_gen: v5e
topology: v5e:2x2
jax: 0.10.0
libtpu: 0.0.40
codegen_flags: <defaults>
</compile_context>

<pallas_src>
import numpy as np
import jax
import jax.numpy as jnp
from jax.experimental import pallas as pl
from jax.experimental.pallas import tpu as pltpu

# ----------------------- static configuration -------------------------------
# metalens_optics_param
NUM_PARTITION = 8            # DOE radial partitions
NUM_LEVEL = 4                # DOE quantization levels
IN_SHAPE = (16, 16)          # DOE / mask plane (input_shape)
OUT_SHAPE = (8, 8)           # PSF plane (output_shape)
IN_DX = 0.5e-6               # input_dx  [m]
OUT_DX = 0.5e-6              # output_dx [m]
LAMBDA = 532e-9              # lambda    [m]
Z = 50e-6                    # propagation distance z [m]
DELTA_N = 0.5                # Delta_n
H_MAX = LAMBDA / DELTA_N     # DOE height giving 2*pi phase
USE_LITHO_MODEL_FLAG = False

# imaging
B, C, H, W = 2, 3, 16, 16    # batch_target NCHW
BC = B * C
K = OUT_SHAPE[0]             # PSF kernel size (square)
PAD_LO = (K - 1) // 2
PAD_HI = K // 2
HI, WI = IN_SHAPE
HO, WO = OUT_SHAPE
NPSF = HO * WO               # 64
NDOE = HI * WI               # 256
NFIELD = 2 * NDOE            # 512 (stacked [Re | Im] flattened field)
NIMG = BC * H * W            # 1536 (flattened sensor image)


# --------------------------- fused forward kernel ----------------------------
def camera_kernel(h01_ref, prop_ref, pcol_ref, noise_ref, sigma_ref,
                  psf_ref, psum_ref, nanf_ref, mask_ref, img_ref):
    """DOE quantization + Fresnel propagation + |U|^2 + 'same' conv + noise."""
    # --- DOE.get_doe_sample(): quantize normalized heights to NUM_LEVEL levels
    h01 = h01_ref[...]                                      # (1, 256) in [0,1]
    # TODO(synk): torch.round is round-half-to-even; floor(x+0.5) can differ by
    # one level exactly on a quantization boundary.
    q = jnp.floor(h01 * (NUM_LEVEL - 1) + 0.5) / (NUM_LEVEL - 1)
    height = q * H_MAX                                      # physical height map
    mask_ref[...] = height
    # TODO(synk): litho_model(mask) branch not modeled (use_litho_model_flag=False);
    # print_pred == mask is returned by the wrapper without a duplicate write.

    # --- height -> phase -> complex unit field exp(i*phase), flattened row-major
    phase = (2.0 * np.pi / LAMBDA) * DELTA_N * height
    u_row = jnp.concatenate([jnp.cos(phase), jnp.sin(phase)], axis=1)  # (1, 512)

    # --- FreeSpaceFwd: scaled-Fresnel propagation as ONE MXU dot with the
    # precomputed real-block kron(Ty, Tx) operator.  Output lanes are
    # [Re(Uo) flat | Im(Uo) flat], flat index p*WO + q.
    field = jnp.dot(u_row, prop_ref[...],
                    preferred_element_type=jnp.float32)     # (1, 128)
    wr = field[:, :NPSF]
    wi = field[:, NPSF:]

    # psf = |Uo|^2 (output quadratic / global phase drop out of |.|^2)
    # TODO(synk): PSF used unnormalized in the conv, matching the reference
    # forward (psf_sum is returned separately, not divided out).
    psf_row = wr * wr + wi * wi                             # (1, 64)
    psf_ref[...] = psf_row
    psum_ref[...] = jnp.sum(psf_row, axis=1, keepdims=True)            # (1, 1)
    nanf_ref[...] = jnp.max((psf_row != psf_row).astype(jnp.float32),
                            axis=1, keepdims=True)                      # (1, 1)

    # --- sensor image: zero-padded 'same' convolution with the (flipped) PSF
    # as a single MXU dot against the wrapper-built tap-major im2col matrix,
    # then additive sensor noise.
    # TODO(synk): original conv2d helper is (likely) FFT-based; implemented as
    # a zero-padded linear 'same' convolution with the flipped PSF (true conv).
    img = jnp.dot(psf_row, pcol_ref[...],
                  preferred_element_type=jnp.float32)       # (1, 1536)
    # TODO(synk): sensor_noise(img, 0.004, 0.02) approximated as additive
    # Gaussian noise with sigma ~ U(0.004, 0.02); randn generated in the
    # wrapper (in-kernel pltpu PRNG skipped to keep lowering simple).
    img_ref[...] = img + sigma_ref[0] * noise_ref[...]


def _camera_pallas(h01_row, prop_t, pcol, noise_row, sigma_arr):
    vmem = pl.BlockSpec(memory_space=pltpu.MemorySpace.VMEM)
    smem = pl.BlockSpec(memory_space=pltpu.MemorySpace.SMEM)
    return pl.pallas_call(
        camera_kernel,
        out_shape=(
            jax.ShapeDtypeStruct((1, NPSF), jnp.float32),   # psf  (flat p*WO+q)
            jax.ShapeDtypeStruct((1, 1), jnp.float32),      # psf_sum
            jax.ShapeDtypeStruct((1, 1), jnp.float32),      # nan flag (0/1)
            jax.ShapeDtypeStruct((1, NDOE), jnp.float32),   # mask (flat, == print_pred)
            jax.ShapeDtypeStruct((1, NIMG), jnp.float32),   # sensor image (flat NCHW)
        ),
        in_specs=[vmem, vmem, vmem, vmem, smem],
        out_specs=(vmem, vmem, vmem, vmem, vmem),
    )(h01_row, prop_t, pcol, noise_row, sigma_arr)


@jax.jit
def camera_forward(batch_target, height01, prop_t, noise, sigma):
    """Full CameraPipeline.forward under one jit (single pallas launch)."""
    # Zero-pad for 'same' conv and build the tap-major im2col matrix in XLA
    # (pure layout plumbing): row t = p*K + q multiplies psf[p, q] in the
    # kernel, so the window offset is (K-1-p, K-1-q)  (true convolution).
    tgt = batch_target.reshape(BC, H, W)
    padded = jnp.pad(tgt, ((0, 0), (PAD_LO, PAD_HI), (PAD_LO, PAD_HI)))
    rows = []
    for p in range(K):
        for q in range(K):
            u, v = K - 1 - p, K - 1 - q
            rows.append(padded[:, u:u + H, v:v + W].reshape(1, NIMG))
    pcol = jnp.concatenate(rows, axis=0)                    # (64, 1536)

    h01_row = height01.reshape(1, NDOE)
    noise_row = noise.reshape(1, NIMG)
    sig = jnp.reshape(sigma, (1,)).astype(jnp.float32)

    psf_row, psum, nanf, mask_row, img_row = _camera_pallas(
        h01_row, prop_t, pcol, noise_row, sig)

    sensor_img = img_row.reshape(B, C, H, W)
    psf = psf_row.reshape(HO, WO)
    mask = mask_row.reshape(HI, WI)
    print_pred = mask                                       # use_litho_model_flag == False
    return sensor_img, psf, psum[0, 0], print_pred, mask, nanf[0, 0]


# ------------------------------ parameter setup ------------------------------
def fresnel_propagation_matrix():
    """Full block-complex single-step Fresnel operator, packed for one MXU dot.

    Uo = scale * Ty @ Ui @ Tx^T  (complex)  ==  Uo_flat = Mc @ Ui_flat with
    Mc = scale * kron(Ty, Tx)  (64 x 256 complex).  Returned real matrix T is
    (512, 128) so that [Re(Ui)|Im(Ui)] @ T = [Re(Uo)|Im(Uo)] (flattened rows).
    """
    k = 2.0 * np.pi / LAMBDA
    y1 = (np.arange(HI) - (HI - 1) / 2) * IN_DX
    x1 = (np.arange(WI) - (WI - 1) / 2) * IN_DX
    y2 = (np.arange(HO) - (HO - 1) / 2) * OUT_DX
    x2 = (np.arange(WO) - (WO - 1) / 2) * OUT_DX
    Ty = np.exp(1j * k * (y1 ** 2) / (2 * Z))[None, :] * \
         np.exp(-1j * k * np.outer(y2, y1) / Z)             # [Ho, Hi]
    Tx = np.exp(1j * k * (x1 ** 2) / (2 * Z))[None, :] * \
         np.exp(-1j * k * np.outer(x2, x1) / Z)             # [Wo, Wi]
    scale = (IN_DX * IN_DX) / (LAMBDA * Z)
    Mc = scale * np.kron(Ty, Tx)                            # [Ho*Wo, Hi*Wi]
    Mr, Mi = Mc.real, Mc.imag
    T = np.block([[Mr.T, Mi.T], [-Mi.T, Mr.T]]).astype(np.float32)  # [512, 128]
    return jnp.asarray(T)


def doe_height01(key):
    """Rotationally-partitioned DOE: one normalized height per radial ring."""
    ring_vals = jax.random.uniform(key, (NUM_PARTITION,), jnp.float32)
    yy, xx = np.meshgrid(np.arange(HI) - (HI - 1) / 2,
                         np.arange(WI) - (WI - 1) / 2, indexing="ij")
    r = np.sqrt(xx ** 2 + yy ** 2)
    r_idx = np.clip((r / r.max() * (NUM_PARTITION - 1)).astype(np.int32),
                    0, NUM_PARTITION - 1)
    return ring_vals[r_idx]                                 # [Hi, Wi] in [0,1]


# ----------------------------------- main ------------------------------------
if __name__ == "__main__":
    key = jax.random.PRNGKey(0)
    k_doe, k_img, k_noise, k_sigma = jax.random.split(key, 4)

    # DOE parameter (deterministic) and packed propagation matrix
    height01 = doe_height01(k_doe).astype(jnp.float32)
    prop_t = fresnel_propagation_matrix()

    # Inputs for forward()
    batch_target = jax.random.uniform(k_img, (B, C, H, W), jnp.float32)
    noise = jax.random.normal(k_noise, (B, C, H, W), jnp.float32)
    sigma = jax.random.uniform(k_sigma, (), jnp.float32, minval=0.004, maxval=0.02)

    # forward(): psf + sensor image in one fused kernel under one jit
    out = camera_forward(batch_target, height01, prop_t, noise, sigma)
    sensor_img, psf, psf_sum, print_pred, mask, nan_flag = jax.block_until_ready(out)

    # TODO(synk): original raises inside get_psf() (before the conv); the NaN
    # flag is computed in-kernel and checked here after the fused forward so
    # no extra device->host sync is introduced between stages.
    if float(nan_flag) != 0.0:
        raise ValueError("NaN in psf")

    print("KERNEL_OK")
</pallas_src>

<mosaic_0001>
module attributes {stable_mosaic.version = 11 : i64} {
  func.func @camera_kernel(%arg0: memref<1x256xf32, #tpu.memory_space<vmem>>, %arg1: memref<512x128xf32, #tpu.memory_space<vmem>>, %arg2: memref<64x1536xf32, #tpu.memory_space<vmem>>, %arg3: memref<1x1536xf32, #tpu.memory_space<vmem>>, %arg4: memref<1xf32, #tpu.memory_space<smem>>, %arg5: memref<1x64xf32, #tpu.memory_space<vmem>>, %arg6: memref<1x1xf32, #tpu.memory_space<vmem>>, %arg7: memref<1x1xf32, #tpu.memory_space<vmem>>, %arg8: memref<1x256xf32, #tpu.memory_space<vmem>>, %arg9: memref<1x1536xf32, #tpu.memory_space<vmem>>) attributes {dimension_semantics = [], scalar_prefetch = 0 : i64, scratch_operands = 0 : i64, tpu.core_type = #tpu.core_type<tc>} {
    %c0 = arith.constant 0 : index
    %c0_0 = arith.constant 0 : index
    %0 = vector.load %arg0[%c0, %c0_0] : memref<1x256xf32, #tpu.memory_space<vmem>>, vector<1x256xf32>
    %cst = arith.constant 3.000000e+00 : f32
    %1 = vector.broadcast %cst : f32 to vector<1x256xf32>
    %2 = arith.mulf %0, %1 : vector<1x256xf32>
    %cst_1 = arith.constant 5.000000e-01 : f32
    %3 = vector.broadcast %cst_1 : f32 to vector<1x256xf32>
    %4 = arith.addf %2, %3 : vector<1x256xf32>
    %5 = math.floor %4 : vector<1x256xf32>
    %cst_2 = arith.constant 3.000000e+00 : f32
    %6 = vector.broadcast %cst_2 : f32 to vector<1x256xf32>
    %7 = arith.divf %5, %6 : vector<1x256xf32>
    %cst_3 = arith.constant 1.064000e-06 : f32
    %8 = vector.broadcast %cst_3 : f32 to vector<1x256xf32>
    %9 = arith.mulf %7, %8 : vector<1x256xf32>
    %c0_4 = arith.constant 0 : index
    %c0_5 = arith.constant 0 : index
    %10 = vector.load %arg8[%c0_4, %c0_5] : memref<1x256xf32, #tpu.memory_space<vmem>>, vector<1x256xf32>
    tpu.vector_store %arg8[%c0_4, %c0_5], %9 {strides = array<i32>} : memref<1x256xf32, #tpu.memory_space<vmem>>, vector<1x256xf32>,
    %cst_6 = arith.constant 5905249.5 : f32
    %11 = vector.broadcast %cst_6 : f32 to vector<1x256xf32>
    %12 = arith.mulf %11, %9 : vector<1x256xf32>
    %13 = math.cos %12 : vector<1x256xf32>
    %14 = math.sin %12 : vector<1x256xf32>
    %15 = tpu.concatenate %13, %14 in 1 : vector<1x256xf32>, vector<1x256xf32> -> vector<1x512xf32>
    %c0_7 = arith.constant 0 : index
    %c0_8 = arith.constant 0 : index
    %16 = vector.load %arg1[%c0_7, %c0_8] : memref<512x128xf32, #tpu.memory_space<vmem>>, vector<512x128xf32>
    %cst_9 = arith.constant dense<0.000000e+00> : vector<1x128xf32>
    %17 = tpu.matmul %15, %16, %cst_9 {dimension_numbers = #tpu.dot_dimension_numbers<[1], [0], [0], [1], [0, 0, 1, 1], [], []>} : vector<1x512xf32>, vector<512x128xf32>, vector<1x128xf32> -> vector<1x128xf32>
    %18 = vector.extract_strided_slice %17 {offsets = [0, 0], sizes = [1, 64], strides = [1, 1]} : vector<1x128xf32> to vector<1x64xf32>
    %19 = vector.extract_strided_slice %17 {offsets = [0, 64], sizes = [1, 64], strides = [1, 1]} : vector<1x128xf32> to vector<1x64xf32>
    %20 = arith.mulf %18, %18 : vector<1x64xf32>
    %21 = arith.mulf %19, %19 : vector<1x64xf32>
    %22 = arith.addf %20, %21 : vector<1x64xf32>
    %c0_10 = arith.constant 0 : index
    %c0_11 = arith.constant 0 : index
    %23 = vector.load %arg5[%c0_10, %c0_11] : memref<1x64xf32, #tpu.memory_space<vmem>>, vector<1x64xf32>
    tpu.vector_store %arg5[%c0_10, %c0_11], %22 {strides = array<i32>} : memref<1x64xf32, #tpu.memory_space<vmem>>, vector<1x64xf32>,
    %cst_12 = arith.constant dense<0.000000e+00> : vector<1xf32>
    %24 = vector.multi_reduction <add>, %22, %cst_12 [1] : vector<1x64xf32> to vector<1xf32>
    %25 = vector.shape_cast %24 : vector<1xf32> to vector<1x1xf32>
    %c0_13 = arith.constant 0 : index
    %c0_14 = arith.constant 0 : index
    %26 = vector.load %arg6[%c0_13, %c0_14] : memref<1x1xf32, #tpu.memory_space<vmem>>, vector<1x1xf32>
    tpu.vector_store %arg6[%c0_13, %c0_14], %25 {strides = array<i32>} : memref<1x1xf32, #tpu.memory_space<vmem>>, vector<1x1xf32>,
    %27 = arith.cmpf one, %22, %22 : vector<1x64xf32>
    %28 = arith.extui %27 : vector<1x64xi1> to vector<1x64xi32>
    %29 = arith.sitofp %28 : vector<1x64xi32> to vector<1x64xf32>
    %cst_15 = arith.constant dense<0xFF800000> : vector<1xf32>
    %30 = vector.multi_reduction <maximumf>, %29, %cst_15 [1] : vector<1x64xf32> to vector<1xf32>
    %31 = vector.shape_cast %30 : vector<1xf32> to vector<1x1xf32>
    %c0_16 = arith.constant 0 : index
    %c0_17 = arith.constant 0 : index
    %32 = vector.load %arg7[%c0_16, %c0_17] : memref<1x1xf32, #tpu.memory_space<vmem>>, vector<1x1xf32>
    tpu.vector_store %arg7[%c0_16, %c0_17], %31 {strides = array<i32>} : memref<1x1xf32, #tpu.memory_space<vmem>>, vector<1x1xf32>,
    %c0_18 = arith.constant 0 : index
    %c0_19 = arith.constant 0 : index
    %33 = vector.load %arg2[%c0_18, %c0_19] : memref<64x1536xf32, #tpu.memory_space<vmem>>, vector<64x1536xf32>
    %cst_20 = arith.constant dense<0.000000e+00> : vector<1x1536xf32>
    %34 = tpu.matmul %22, %33, %cst_20 {dimension_numbers = #tpu.dot_dimension_numbers<[1], [0], [0], [1], [0, 0, 1, 1], [], []>} : vector<1x64xf32>, vector<64x1536xf32>, vector<1x1536xf32> -> vector<1x1536xf32>
    %c0_21 = arith.constant 0 : index
    %35 = memref.load %arg4[%c0_21] : memref<1xf32, #tpu.memory_space<smem>>
    %c0_22 = arith.constant 0 : index
    %c0_23 = arith.constant 0 : index
    %36 = vector.load %arg3[%c0_22, %c0_23] : memref<1x1536xf32, #tpu.memory_space<vmem>>, vector<1x1536xf32>
    %37 = vector.broadcast %35 : f32 to vector<1x1536xf32>
    %38 = arith.mulf %37, %36 : vector<1x1536xf32>
    %39 = arith.addf %34, %38 : vector<1x1536xf32>
    %c0_24 = arith.constant 0 : index
    %c0_25 = arith.constant 0 : index
    %40 = vector.load %arg9[%c0_24, %c0_25] : memref<1x1536xf32, #tpu.memory_space<vmem>>, vector<1x1536xf32>
    tpu.vector_store %arg9[%c0_24, %c0_25], %39 {strides = array<i32>} : memref<1x1536xf32, #tpu.memory_space<vmem>>, vector<1x1536xf32>,
    return
  }
}

</mosaic_0001>

<bundles_post_ra>
// kernel: camera_forward.1
= control target key start
LH: loop header
LB: loop body
LE: loop exit
PB: predicated region body
PF: predicated region fallthrough
CT: control target
= control target key end

     0   :  { %16 = vsyncpa [#allocation4], 0  ;;  %v1076_v6 = vmov 3.0   ;;  %s1746_s0 = inlined_call_operand.vmem [shape: f32[1,256], index: 0, kind: input, shape index: {}]   ;;  %s1747_s1 = inlined_call_operand.vmem [shape: f32[512,128], index: 1, kind: input, shape index: {}]   ;;  %s1748_s2 = inlined_call_operand.vmem [shape: f32[64,1536], index: 2, kind: input, shape index: {}]   ;;  %s1749_s3 = inlined_call_operand.vmem [shape: f32[1,1536], index: 3, kind: input, shape index: {}]   ;;  %s1750_s4 = inlined_call_operand.<no memory space> [shape: f32[1], index: 4, kind: input, shape index: {}]   ;;  %s1751_s5 = inlined_call_operand.vmem [shape: f32[1,64], index: 5, kind: output, shape index: {0}]   ;;  %s1752_s6 = inlined_call_operand.hbm [shape: f32[1,1], index: 6, kind: output, shape index: {1}]   ;;  %s1753_s7 = inlined_call_operand.hbm [shape: f32[1,1], index: 7, kind: output, shape index: {2}]   ;;  %s1754_s8 = inlined_call_operand.vmem [shape: f32[1,256], index: 8, kind: output, shape index: {3}]   ;;  %s1755_s9 = inlined_call_operand.vmem [shape: f32[1,1536], index: 9, kind: output, shape index: {4}]  }
   0x1   :  { %v413_v0 = vld [vmem:[%s1747_s1 + $0x178] sm:$0xff]  ;;  %v412_v1 = vld [vmem:[%s1747_s1 + $0x170] sm:$0xff]  ;;  %v411_v5 = vld [vmem:[%s1747_s1 + $0x168] sm:$0xff]  ;;  %1022 = vrcp.f32 %v1076_v6 }
   0x2   :  { %v429_v2 = vld [vmem:[%s1747_s1 + $0x1f8] sm:$0xff]  ;;  %470 = vmatpush.msra.mxu2 %v413_v0  ;;  %v428_v7 = vld [vmem:[%s1747_s1 + $0x1f0] sm:$0xff]  ;;  %v427_v10 = vld [vmem:[%s1747_s1 + $0x1e8] sm:$0xff] }
   0x3   :  { %490 = vmatpush.msra.mxu3 %v429_v2  ;;  %v381_v3 = vld [vmem:[%s1747_s1 + $0x78] sm:$0xff]  ;;  %v380_v8 = vld [vmem:[%s1747_s1 + $0x70] sm:$0xff]  ;;  %v379_v11 = vld [vmem:[%s1747_s1 + $0x68] sm:$0xff] }
   0x4   :  { %v397_v4 = vld [vmem:[%s1747_s1 + $0xf8] sm:$0xff]  ;;  %430 = vmatpush.msra.mxu0 %v381_v3  ;;  %v396_v9 = vld [vmem:[%s1747_s1 + $0xf0] sm:$0xff]  ;;  %471 = vmatpush.msra.mxu2 %v412_v1  ;;  %v410_v12 = vld [vmem:[%s1747_s1 + $0x160] sm:$0xff] }
   0x5   :  { %450 = vmatpush.msra.mxu1 %v397_v4  ;;  %491 = vmatpush.msra.mxu3 %v428_v7  ;;  %v395_v13 = vld [vmem:[%s1747_s1 + $0xe8] sm:$0xff]  ;;  %v426_v14 = vld [vmem:[%s1747_s1 + $0x1e0] sm:$0xff]  ;;  %v409_v17 = vld [vmem:[%s1747_s1 + $0x158] sm:$0xff] }
   0x6   :  { %431 = vmatpush.msra.mxu0 %v380_v8  ;;  %472 = vmatpush.msra.mxu2 %v411_v5  ;;  %v378_v15 = vld [vmem:[%s1747_s1 + $0x60] sm:$0xff]  ;;  %v425_v18 = vld [vmem:[%s1747_s1 + $0x1d8] sm:$0xff]  ;;  %v408_v22 = vld [vmem:[%s1747_s1 + $0x150] sm:$0xff] }
   0x7   :  { %451 = vmatpush.msra.mxu1 %v396_v9  ;;  %492 = vmatpush.msra.mxu3 %v427_v10  ;;  %v394_v16 = vld [vmem:[%s1747_s1 + $0xe0] sm:$0xff]  ;;  %v1192_v19 = vpop.eup %1022  ;;  %v377_v20 = vld [vmem:[%s1747_s1 + $0x58] sm:$0xff]  ;;  %v424_v23 = vld [vmem:[%s1747_s1 + $0x1d0] sm:$0xff] }
   0x8   :  { %432 = vmatpush.msra.mxu0 %v379_v11  ;;  %473 = vmatpush.msra.mxu2 %v410_v12  ;;  %v393_v21 = vld [vmem:[%s1747_s1 + $0xd8] sm:$0xff]  ;;  %v33_v24 = vmul.f32 3.0, %v1192_v19  ;;  %v376_v25 = vld [vmem:[%s1747_s1 + $0x50] sm:$0xff]  ;;  %v407_v27 = vld [vmem:[%s1747_s1 + $0x148] sm:$0xff]  ;;  %vm37_vm0 = vweird.f32 %v1192_v19 }
   0x9   :  { %452 = vmatpush.msra.mxu1 %v395_v13  ;;  %493 = vmatpush.msra.mxu3 %v426_v14  ;;  %v392_v26 = vld [vmem:[%s1747_s1 + $0xd0] sm:$0xff]  ;;  %v423_v28 = vld [vmem:[%s1747_s1 + $0x1c8] sm:$0xff]  ;;  %v406_v32 = vld [vmem:[%s1747_s1 + $0x140] sm:$0xff] }
   0xa   :  { %433 = vmatpush.msra.mxu0 %v378_v15  ;;  %474 = vmatpush.msra.mxu2 %v409_v17  ;;  %v375_v29 = vld [vmem:[%s1747_s1 + $0x48] sm:$0xff]  ;;  %v34_v31 = vsub.f32 1.0, %v33_v24  ;;  %v422_v33 = vld [vmem:[%s1747_s1 + $0x1c0] sm:$0xff]  ;;  %v405_v36 = vld [vmem:[%s1747_s1 + $0x138] sm:$0xff] }
   0xb   :  { %453 = vmatpush.msra.mxu1 %v394_v16  ;;  %494 = vmatpush.msra.mxu3 %v425_v18  ;;  %v391_v30 = vld [vmem:[%s1747_s1 + $0xc8] sm:$0xff]  ;;  %v374_v34 = vld [vmem:[%s1747_s1 + $0x40] sm:$0xff]  ;;  %v421_v37 = vld [vmem:[%s1747_s1 + $0x1b8] sm:$0xff] }
   0xc   :  { %434 = vmatpush.msra.mxu0 %v377_v20  ;;  %475 = vmatpush.msra.mxu2 %v408_v22  ;;  %v390_v35 = vld [vmem:[%s1747_s1 + $0xc0] sm:$0xff]  ;;  %v373_v38 = vld [vmem:[%s1747_s1 + $0x38] sm:$0xff]  ;;  %v35_v40 = vmul.f32 %v1192_v19, %v34_v31  ;;  %v404_v41 = vld [vmem:[%s1747_s1 + $0x130] sm:$0xff] }
   0xd   :  { %454 = vmatpush.msra.mxu1 %v393_v21  ;;  %495 = vmatpush.msra.mxu3 %v424_v23  ;;  %v389_v39 = vld [vmem:[%s1747_s1 + $0xb8] sm:$0xff]  ;;  %v420_v42 = vld [vmem:[%s1747_s1 + $0x1b0] sm:$0xff]  ;;  %v403_v45 = vld [vmem:[%s1747_s1 + $0x128] sm:$0xff] }
   0xe   :  { %435 = vmatpush.msra.mxu0 %v376_v25  ;;  %476 = vmatpush.msra.mxu2 %v407_v27  ;;  %v372_v43 = vld [vmem:[%s1747_s1 + $0x30] sm:$0xff]  ;;  %v419_v46 = vld [vmem:[%s1747_s1 + $0x1a8] sm:$0xff]  ;;  %v28_v49 = vld [vmem:[%s1746_s0] sm:$0x3]  ;;  %v36_v50 = vadd.f32 %v1192_v19, %v35_v40 }
   0xf   :  { %455 = vmatpush.msra.mxu1 %v392_v26  ;;  %496 = vmatpush.msra.mxu3 %v423_v28  ;;  %v388_v44 = vld [vmem:[%s1747_s1 + $0xb0] sm:$0xff]  ;;  %v371_v47 = vld [vmem:[%s1747_s1 + $0x28] sm:$0xff]  ;;  %v402_v51 = vld [vmem:[%s1747_s1 + $0x120] sm:$0xff]  ;;  %v29_v53 = vmul.f32 3.0, %v28_v49 }
  0x10   :  { %436 = vmatpush.msra.mxu0 %v375_v29  ;;  %477 = vmatpush.msra.mxu2 %v406_v32  ;;  %v387_v48 = vld [vmem:[%s1747_s1 + $0xa8] sm:$0xff]  ;;  %v418_v52 = vld [vmem:[%s1747_s1 + $0x1a0] sm:$0xff] }
  0x11   :  { %456 = vmatpush.msra.mxu1 %v391_v30  ;;  %497 = vmatpush.msra.mxu3 %v422_v33 }
  0x12   :  { %437 = vmatpush.msra.mxu0 %v374_v34  ;;  %478 = vmatpush.msra.mxu2 %v405_v36 }
  0x13   :  { %457 = vmatpush.msra.mxu1 %v390_v35  ;;  %498 = vmatpush.msra.mxu3 %v421_v37 }
  0x14   :  { %438 = vmatpush.msra.mxu0 %v373_v38  ;;  %479 = vmatpush.msra.mxu2 %v404_v41 }
  0x15   :  { %458 = vmatpush.msra.mxu1 %v389_v39  ;;  %499 = vmatpush.msra.mxu3 %v420_v42 }
  0x16   :  { %439 = vmatpush.msra.mxu0 %v372_v43 }
  0x17   :  { %459 = vmatpush.msra.mxu1 %v388_v44 }
  0x18   :  { %17 = vsyncpa [#allocation6], 0  ;;  %480 = vmatpush.msra.mxu2 %v403_v45  ;;  %500 = vmatpush.msra.mxu3 %v419_v46  ;;  %v370_v54 = vld [vmem:[%s1747_s1 + $0x20] sm:$0xff]  ;;  %v401_v56 = vld [vmem:[%s1747_s1 + $0x118] sm:$0xff]  ;;  %v30_v58 = vadd.f32 0.5, %v29_v53  ;;  %v38_v61 = vsel %vm37_vm0, %v1192_v19, %v36_v50  ;;  %s1084_s29 = smov 64  }
  0x19   :  { %v386_v55 = vld [vmem:[%s1747_s1 + $0xa0] sm:$0xff]  ;;  %440 = vmatpush.msra.mxu0 %v371_v47  ;;  %460 = vmatpush.msra.mxu1 %v387_v48  ;;  %v417_v57 = vld [vmem:[%s1747_s1 + $0x198] sm:$0xff]  ;;  %v400_v62 = vld [vmem:[%s1747_s1 + $0x110] sm:$0xff]  ;;  %v1077_v20 = vmov 683565275   ;;  %s1086_s18 = smov [#allocation3]  }
  0x1a   :  { %481 = vmatpush.msra.mxu2 %v402_v51  ;;  %501 = vmatpush.msra.mxu3 %v418_v52  ;;  %v369_v59 = vld [vmem:[%s1747_s1 + $0x18] sm:$0xff]  ;;  %v416_v63 = vld [vmem:[%s1747_s1 + $0x190] sm:$0xff]  ;;  %v31_v0 = vfloor.f32 %v30_v58  ;;  %v399_v3 = vld [vmem:[%s1747_s1 + $0x108] sm:$0xff]  ;;  %v1078_v22 = vmov 2475754826   ;;  %s956_s20 = sshll.u32 %s1752_s6, 4  ;;  %s957_s20 = int_to_ptr.hbm [resolvable:$true] %s956_s20 }
  0x1b   :  { %v385_v60 = vld [vmem:[%s1747_s1 + $0x98] sm:$0xff]  ;;  %441 = vmatpush.msra.mxu0 %v370_v54  ;;  %461 = vmatpush.msra.mxu1 %v386_v55  ;;  %v368_v1 = vld [vmem:[%s1747_s1 + $0x10] sm:$0xff]  ;;  %v415_v4 = vld [vmem:[%s1747_s1 + $0x188] sm:$0xff]  ;;  %v1079_v24 = vmov 2131351028   ;;  %s1087_s21 = smov [#allocation5]  }
  0x1c   :  { %482 = vmatpush.msra.mxu2 %v401_v56  ;;  %502 = vmatpush.msra.mxu3 %v417_v57  ;;  %v384_v2 = vld [vmem:[%s1747_s1 + $0x90] sm:$0xff]  ;;  %v39_v5 = vmul.f32 %v38_v61, %v31_v0  ;;  %v398_v6 = vld [vmem:[%s1747_s1 + $0x100] sm:$0xff]  ;;  %v1080_v26 = vmov 2102212464   ;;  %v1081_v28 = vmov 920167782  }
  0x1d   :  { %442 = vmatpush.msra.mxu0 %v369_v59  ;;  %462 = vmatpush.msra.mxu1 %v385_v60  ;;  %v1082_v34 = vmov 1326507024   ;;  %s965_s22 = sshll.u32 %s1087_s21, 4  ;;  %s967_s25 = sshll.u32 %s1753_s7, 4  ;;  %s966_s22 = int_to_ptr.vmem [resolvable:$true] %s965_s22  ;;  %s968_s25 = int_to_ptr.hbm [resolvable:$true] %s967_s25 }
  0x1e   :  { %483 = vmatpush.msra.mxu2 %v400_v62  ;;  %503 = vmatpush.msra.mxu3 %v416_v63  ;;  %v1325_v7 = vmul.f32 1.064e-06, %v39_v5 }
  0x1f   :  { %443 = vmatpush.msra.mxu0 %v368_v1  ;;  %463 = vmatpush.msra.mxu1 %v384_v2 }
  0x20   :  { %484 = vmatpush.msra.mxu2 %v399_v3  ;;  %504 = vmatpush.msra.mxu3 %v415_v4  ;;  %v1328_v8 = vmul.f32 5905249.5, %v1325_v7 }
  0x22   :  { %485 = vmatpush.msra.mxu2 %v398_v6  ;;  %v50_v9 = vand.u32 2139095040, %v1328_v8  ;;  %v47_v11 = vand.u32 2147483647, %v1328_v8  ;;  %vm49_vm13 = vcmp.lt.s32.totalorder %v1328_v8, 0 }
  0x24   :  { %v51_v10 = vshrl.u32 %v50_v9, 23  ;;  %v54_v14 = vand.u32 8388607, %v47_v11  ;;  %vm48_vm14 = vcmp.le.f32.partialorder %v47_v11, 0.7853982 }
  0x26   :  { %v991_v12 = vadd.s32 4294967169, %v51_v10  ;;  %v55_v17 = vor.u32 8388608, %v54_v14  ;;  %v1083_v10 = vmov 0  }
  0x28   :  { %v57_v13 = vadd.s32 1, %v991_v12  ;;  %v1337_v36 = vshll.u32 %v55_v17, 8 }
  0x2a   :  { %vm58_vm1 = vcmp.gt.s32.totalorder %v57_v13, 0  ;;  %v96_v48 = vand.u32 65535, %v1337_v36  ;;  %v97_v49 = vshrl.u32 %v1337_v36, 16 }
  0x2b   :  { %v59_v15 = vsel %vm58_vm1, %v57_v13, 0 }
  0x2c   :  { %v61_v16 = vand.u32 31, %v59_v15  ;;  %v1334_v18 = vshrl.u32 %v59_v15, 5 }
  0x2e   :  { %v62_v19 = vsub.s32 32, %v61_v16  ;;  %v64_v21 = vshll.u32 %v1077_v20, %v61_v16  ;;  %v67_v23 = vshll.u32 %v1078_v22, %v61_v16  ;;  %v70_v25 = vshll.u32 %v1079_v24, %v61_v16 }
  0x2f   :  { %v73_v27 = vshll.u32 %v1080_v26, %v61_v16  ;;  %v76_v29 = vshll.u32 %v1081_v28, %v61_v16  ;;  %vm79_vm2 = vcmp.lt.s32.totalorder %v1334_v18, 1  ;;  %vm82_vm3 = vcmp.lt.s32.totalorder %v1334_v18, 4 }
  0x30   :  { %v65_v30 = vshrl.u32 %v1078_v22, %v62_v19  ;;  %v68_v31 = vshrl.u32 %v1079_v24, %v62_v19  ;;  %v71_v32 = vshrl.u32 %v1080_v26, %v62_v19  ;;  %v74_v33 = vshrl.u32 %v1081_v28, %v62_v19 }
  0x31   :  { %v77_v35 = vshrl.u32 %v1082_v34, %v62_v19  ;;  %vm81_vm4 = vcmp.lt.s32.totalorder %v1334_v18, 3  ;;  %vm80_vm5 = vcmp.lt.s32.totalorder %v1334_v18, 2  ;;  %v63_v56 = vshrl.u32 %v1077_v20, %v62_v19 }
  0x32   :  { %v66_v37 = vor.u32 %v65_v30, %v64_v21  ;;  %v69_v38 = vor.u32 %v68_v31, %v67_v23  ;;  %v72_v39 = vor.u32 %v71_v32, %v70_v25  ;;  %v75_v40 = vor.u32 %v74_v33, %v73_v27 }
  0x33   :  { %v78_v41 = vor.u32 %v77_v35, %v76_v29 }
  0x34   :  { %v87_v42 = vsel %vm79_vm2, %v66_v37, %v69_v38  ;;  %v91_v43 = vsel %vm79_vm2, %v69_v38, %v72_v39  ;;  %v88_v44 = vsel %vm82_vm3, %v75_v40, 920167782  ;;  %v83_v5 = vsel %vm79_vm2, %v63_v56, %v66_v37  ;;  %v383_v56 = vld [vmem:[%s1747_s1 + $0x88] sm:$0xff] }
  0x35   :  { %v92_v45 = vsel %vm82_vm3, %v78_v41, 1326507024  ;;  %v89_v46 = vsel %vm81_vm4, %v72_v39, %v88_v44  ;;  %v84_v9 = vsel %vm82_vm3, %v72_v39, 2102212464  ;;  %464 = vmatpush.msra.mxu1 %v383_v56  ;;  %v554_v56 = vld [vmem:[%s1748_s2 + $0xc0] sm:$0xff] }
  0x36   :  { %v93_v47 = vsel %vm81_vm4, %v75_v40, %v92_v45  ;;  %v90_v50 = vsel %vm80_vm5, %v87_v42, %v89_v46  ;;  %v85_v21 = vsel %vm81_vm4, %v69_v38, %v84_v9 }
  0x37   :  { %v94_v51 = vsel %vm80_vm5, %v91_v43, %v93_v47  ;;  %v120_v54 = vand.u32 65535, %v90_v50  ;;  %v121_v55 = vshrl.u32 %v90_v50, 16  ;;  %v86_v29 = vsel %vm80_vm5, %v83_v5, %v85_v21 }
  0x38   :  { %v98_v52 = vand.u32 65535, %v94_v51  ;;  %v99_v53 = vshrl.u32 %v94_v51, 16  ;;  %v140_v33 = vmul.u32 %v1337_v36, %v86_v29  ;;  %vm190_vm5 = vweird.f32 %v1328_v8 }
  0x39   :  { %v122_v60 = vmul.u32 %v120_v54, %v96_v48  ;;  %v123_v61 = vmul.u32 %v121_v55, %v96_v48  ;;  %v124_v62 = vmul.u32 %v120_v54, %v97_v49  ;;  %v125_v2 = vmul.u32 %v121_v55, %v97_v49  ;;  %v367_v55 = vld [vmem:[%s1747_s1 + $0x8] sm:$0xff] }
  0x3a   :  { %v100_v57 = vmul.u32 %v98_v52, %v96_v48  ;;  %v101_v58 = vmul.u32 %v99_v53, %v96_v48  ;;  %v102_v59 = vmul.u32 %v98_v52, %v97_v49  ;;  %v103_v63 = vmul.u32 %v99_v53, %v97_v49  ;;  %444 = vmatpush.msra.mxu0 %v367_v55  ;;  %v569_v55 = vld [vmem:[%s1748_s2 + $0x138] sm:$0xff] }
  0x3b   :  { %v126_v3 = vshll.u32 %v123_v61, 16  ;;  %v128_v4 = vshll.u32 %v124_v62, 16  ;;  %v127_v19 = vshrl.u32 %v123_v61, 16  ;;  %v129_v25 = vshrl.u32 %v124_v62, 16 }
  0x3c   :  { %v104_v0 = vshll.u32 %v101_v58, 16  ;;  %v106_v1 = vshll.u32 %v102_v59, 16  ;;  %v105_v14 = vshrl.u32 %v101_v58, 16  ;;  %v107_v22 = vshrl.u32 %v102_v59, 16  ;;  %v366_v59 = vld [vmem:[%s1747_s1] sm:$0xff] }
  0x3d   :  { %vm130_vm7 = vc.u32 %v122_v60, %v126_v3  ;;  %v132_v13 = vadd.s32 %v126_v3, %v122_v60  ;;  %v382_v60 = vld [vmem:[%s1747_s1 + $0x80] sm:$0xff]  ;;  %445 = vmatpush.msra.mxu0 %v366_v59  ;;  %v557_v59 = vld [vmem:[%s1748_s2 + $0xd8] sm:$0xff] }
  0x3e   :  { %vm108_vm6 = vc.u32 %v100_v57, %v104_v0  ;;  %v110_v6 = vadd.s32 %v104_v0, %v100_v57  ;;  %v131_v16 = vsel %vm130_vm7, 1, %v1083_v10  ;;  %v414_v57 = vld [vmem:[%s1747_s1 + $0x180] sm:$0xff]  ;;  %465 = vmatpush.msra.mxu1 %v382_v60  ;;  %vm516_vm7 = vcmask 516096  }
  0x3f   :  { %v109_v12 = vsel %vm108_vm6, 1, %v1083_v10  ;;  %v133_v20 = vadd.s32 %v131_v16, %v125_v2  ;;  %vm134_vm9 = vc.u32 %v132_v13, %v128_v4  ;;  %v136_v28 = vadd.s32 %v132_v13, %v128_v4  ;;  %505 = vmatpush.msra.mxu3 %v414_v57  ;;  %v555_v57 = vld [vmem:[%s1748_s2 + $0xc8] sm:$0xff]  ;;  %v542_v60 = vld [vmem:[%s1748_s2 + $0x60] sm:$0xff] }
  0x40   :  { %v111_v15 = vadd.s32 %v109_v12, %v103_v63  ;;  %vm112_vm8 = vc.u32 %v110_v6, %v106_v1  ;;  %v135_v24 = vsel %vm134_vm9, 1, %v1083_v10  ;;  %vm658_vm6 = vcmask 523264  }
  0x41   :  { %v113_v17 = vsel %vm112_vm8, 1, %v1083_v10  ;;  %v137_v26 = vadd.s32 %v135_v24, %v133_v20  ;;  %vm521_vm9 = vcmask 0  }
  0x42   :  { %v115_v23 = vadd.s32 %v113_v17, %v111_v15 }
  0x43   :  { %v138_v30 = vadd.s32 %v137_v26, %v127_v19 }
  0x44   :  { %v116_v27 = vadd.s32 %v115_v23, %v105_v14 }
  0x45   :  { %v139_v32 = vadd.s32 %v138_v30, %v129_v25 }
  0x46   :  { %v117_v31 = vadd.s32 %v116_v27, %v107_v22 }
  0x47   :  { %v143_v34 = vadd.s32 1, %v139_v32 }
  0x48   :  { %vm142_vm10 = vc.u32 %v117_v31, %v136_v28  ;;  %v141_v18 = vadd.s32 %v136_v28, %v117_v31 }
  0x49   :  { %v144_v35 = vsel %vm142_vm10, %v143_v34, %v139_v32 }
  0x4a   :  { %v145_v37 = vadd.s32 %v144_v35, %v140_v33 }
  0x4c   :  { %v146_v38 = vadd.s32 536870912, %v145_v37 }
  0x4e   :  { %v147_v39 = vshrl.u32 %v146_v38, 30 }
  0x50   :  { %v148_v40 = vshll.u32 %v147_v39, 30  ;;  %v171_v62 = vsub.s32 4, %v147_v39 }
  0x52   :  { %v149_v41 = vsub.s32 %v145_v37, %v148_v40  ;;  %v172_v1 = vsel %vm49_vm13, %v171_v62, %v147_v39  ;;  %v614_v39 = vld [vmem:[%s1748_s2 + $0x2a0] sm:$0xff]  ;;  %v616_v40 = vld [vmem:[%s1748_s2 + $0x2b0] sm:$0xff] }
  0x53   :  { %v174_v4 = vsel %vm48_vm14, 0, %v172_v1  ;;  %670 = vmatpush.msrb.mxu0 %v614_v39  ;;  %710 = vmatpush.msrb.mxu2 %v616_v40  ;;  %v544_v62 = vld [vmem:[%s1748_s2 + $0x70] sm:$0xff]  ;;  %v531_v1 = vld [vmem:[%s1748_s2 + $0x8] sm:$0xff] }
  0x54   :  { %vm150_vm11 = vcmp.lt.s32.totalorder %v149_v41, 0  ;;  %v151_v42 = vsub.s32 0, %v149_v41  ;;  %v345_v12 = vadd.s32 3, %v174_v4  ;;  %v191_v19 = vand.u32 3, %v174_v4  ;;  %v618_v4 = vld [vmem:[%s1748_s2 + $0x2c0] sm:$0xff]  ;;  %v547_v40 = vld [vmem:[%s1748_s2 + $0x88] sm:$0xff] }
  0x56   :  { %v152_v43 = vsel %vm150_vm11, %v151_v42, %v149_v41  ;;  %v346_v17 = vand.u32 3, %v345_v12  ;;  %vm196_vm0 = vcmp.eq.s32.totalorder %v191_v19, 2  ;;  %vm193_vm3 = vcmp.eq.s32.totalorder %v191_v19, 0  ;;  %v602_v42 = vld [vmem:[%s1748_s2 + $0x240] sm:$0xff]  ;;  %v607_v12 = vld [vmem:[%s1748_s2 + $0x268] sm:$0xff] }
  0x57   :  { %v153_v44 = vclz %v152_v43  ;;  %vm192_vm4 = vcmp.lt.s32.totalorder %v191_v19, 2  ;;  %v603_v43 = vld [vmem:[%s1748_s2 + $0x248] sm:$0xff]  ;;  %671 = vmatpush.msrb.mxu0 %v602_v42  ;;  %v597_v19 = vld [vmem:[%s1748_s2 + $0x218] sm:$0xff]  ;;  %vm924_vm11 = vcmask 1040384  }
  0x58   :  { %vm351_vm15 = vcmp.eq.s32.totalorder %v346_v17, 2  ;;  %vm347_vm1 = vcmp.lt.s32.totalorder %v346_v17, 2  ;;  %vm348_vm2 = vcmp.eq.s32.totalorder %v346_v17, 0  ;;  %v596_v17 = vld [vmem:[%s1748_s2 + $0x210] sm:$0xff]  ;;  %v549_v42 = vld [vmem:[%s1748_s2 + $0x98] sm:$0xff] }
  0x59   :  { %v992_v45 = vadd.s32 4294967294, %v153_v44  ;;  %v604_v44 = vld [vmem:[%s1748_s2 + $0x250] sm:$0xff] }
  0x5a   :  { %711 = vmatpush.msrb.mxu2 %v604_v44  ;;  %v535_v44 = vld [vmem:[%s1748_s2 + $0x28] sm:$0xff] }
  0x5b   :  { %vm993_vm12 = vcmp.lt.s32.totalorder %v992_v45, 0 }
  0x5c   :  { %v156_v46 = vsel %vm993_vm12, 0, %v992_v45  ;;  %v605_v45 = vld [vmem:[%s1748_s2 + $0x258] sm:$0xff]  ;;  %vm926_vm12 = vcmask 1042434  }
  0x5d   :  { %v157_v47 = vsub.s32 32, %v156_v46  ;;  %v158_v48 = vshll.u32 %v149_v41, %v156_v46  ;;  %v161_v49 = vsub.s32 4294967266, %v156_v46  ;;  %v617_v41 = vld [vmem:[%s1748_s2 + $0x2b8] sm:$0xff]  ;;  %v591_v46 = vld [vmem:[%s1748_s2 + $0x1e8] sm:$0xff] }
  0x5e   :  { %730 = vmatpush.msrb.mxu3 %v617_v41  ;;  %v548_v41 = vld [vmem:[%s1748_s2 + $0x90] sm:$0xff] }
  0x5f   :  { %v159_v36 = vshrl.u32 %v141_v18, %v157_v47  ;;  %v162_v50 = vadd.s32 127, %v161_v49  ;;  %v590_v18 = vld [vmem:[%s1748_s2 + $0x1e0] sm:$0xff]  ;;  %v592_v47 = vld [vmem:[%s1748_s2 + $0x1f0] sm:$0xff] }
  0x60   :  { %731 = vmatpush.msrb.mxu3 %v605_v45  ;;  %v578_v49 = vld [vmem:[%s1748_s2 + $0x180] sm:$0xff]  ;;  %672 = vmatpush.msrb.mxu0 %v590_v18  ;;  %v536_v45 = vld [vmem:[%s1748_s2 + $0x30] sm:$0xff]  ;;  %v537_v18 = vld [vmem:[%s1748_s2 + $0x38] sm:$0xff] }
  0x61   :  { %v160_v51 = vor.u32 %v159_v36, %v158_v48  ;;  %v163_v52 = vshll.u32 %v162_v50, 23  ;;  %v593_v48 = vld [vmem:[%s1748_s2 + $0x1f8] sm:$0xff]  ;;  %v579_v36 = vld [vmem:[%s1748_s2 + $0x188] sm:$0xff]  ;;  %v580_v50 = vld [vmem:[%s1748_s2 + $0x190] sm:$0xff]  ;;  %712 = vmatpush.msrb.mxu2 %v592_v47 }
  0x62   :  { %732 = vmatpush.msrb.mxu3 %v593_v48  ;;  %673 = vmatpush.msrb.mxu0 %v578_v49  ;;  %v622_v48 = vld [vmem:[%s1748_s2 + $0x2e0] sm:$0xff]  ;;  %v623_v49 = vld [vmem:[%s1748_s2 + $0x2e8] sm:$0xff] }
  0x63   :  { %v164_v53 = vor.u32 4788187, %v163_v52  ;;  %v167_v54 = vcvt.s32.f32 %v160_v51  ;;  %v581_v51 = vld [vmem:[%s1748_s2 + $0x198] sm:$0xff]  ;;  %v566_v52 = vld [vmem:[%s1748_s2 + $0x120] sm:$0xff]  ;;  %713 = vmatpush.msrb.mxu2 %v580_v50 }
  0x64   :  { %733 = vmatpush.msrb.mxu3 %v581_v51  ;;  %674 = vmatpush.msrb.mxu0 %v566_v52  ;;  %v625_v50 = vld [vmem:[%s1748_s2 + $0x2f8] sm:$0xff]  ;;  %v610_v52 = vld [vmem:[%s1748_s2 + $0x280] sm:$0xff] }
  0x65   :  { %v165_v58 = vand.u32 2147483647, %v164_v53  ;;  %v567_v53 = vld [vmem:[%s1748_s2 + $0x128] sm:$0xff] }
  0x66   :  { %734 = vmatpush.msrb.mxu3 %v569_v55  ;;  %675 = vmatpush.msrb.mxu0 %v554_v56  ;;  %v611_v55 = vld [vmem:[%s1748_s2 + $0x288] sm:$0xff]  ;;  %v612_v56 = vld [vmem:[%s1748_s2 + $0x290] sm:$0xff] }
  0x67   :  { %v168_v61 = vmul.f32 %v167_v54, %v165_v58  ;;  %v568_v54 = vld [vmem:[%s1748_s2 + $0x130] sm:$0xff] }
  0x68   :  { %v556_v58 = vld [vmem:[%s1748_s2 + $0xd0] sm:$0xff]  ;;  %714 = vmatpush.msrb.mxu2 %v568_v54  ;;  %735 = vmatpush.msrb.mxu3 %v557_v59  ;;  %v598_v59 = vld [vmem:[%s1748_s2 + $0x220] sm:$0xff] }
  0x69   :  { %v169_v63 = vxor.u32 2147483648, %v168_v61  ;;  %676 = vmatpush.msrb.mxu0 %v542_v60  ;;  %v599_v60 = vld [vmem:[%s1748_s2 + $0x228] sm:$0xff] }
  0x6a   :  { %715 = vmatpush.msrb.mxu2 %v556_v58 }
  0x6b   :  { %v170_v0 = vsel %vm49_vm13, %v169_v63, %v168_v61  ;;  %v543_v61 = vld [vmem:[%s1748_s2 + $0x68] sm:$0xff]  ;;  %v545_v63 = vld [vmem:[%s1748_s2 + $0x78] sm:$0xff]  ;;  %vm928_vm13 = vcmask 1041408  }
  0x6c   :  { %v173_v2 = vsel %vm48_vm14, %v1328_v8, %v170_v0  ;;  %v615_v8 = vld [vmem:[%s1748_s2 + $0x2a8] sm:$0xff]  ;;  %v530_v0 = vld [vmem:[%s1748_s2] sm:$0xff]  ;;  %716 = vmatpush.msrb.mxu2 %v544_v62  ;;  %736 = vmatpush.msrb.mxu3 %v545_v63  ;;  %v601_v62 = vld [vmem:[%s1748_s2 + $0x238] sm:$0xff]  ;;  %vm930_vm14 = vcmask 1044484  }
  0x6d   :  { %v175_v3 = vmul.f32 %v173_v2, %v173_v2  ;;  %690 = vmatpush.msrb.mxu1 %v615_v8  ;;  %677 = vmatpush.msrb.mxu0 %v530_v0  ;;  %v546_v8 = vld [vmem:[%s1748_s2 + $0x80] sm:$0xff]  ;;  %v587_v0 = vld [vmem:[%s1748_s2 + $0x1c8] sm:$0xff] }
  0x6e   :  { %v586_v63 = vld [vmem:[%s1748_s2 + $0x1c0] sm:$0xff] }
  0x6f   :  { %v176_v5 = vmul.f32 -0.001358992, %v175_v3  ;;  %v183_v6 = vmul.f32 -0.00019511016, %v175_v3  ;;  %691 = vmatpush.msrb.mxu1 %v603_v43  ;;  %v534_v43 = vld [vmem:[%s1748_s2 + $0x20] sm:$0xff] }
  0x71   :  { %v177_v9 = vadd.f32 0.041655596, %v176_v5  ;;  %v184_v10 = vadd.f32 0.008332121, %v183_v6  ;;  %692 = vmatpush.msrb.mxu1 %v591_v46  ;;  %v619_v5 = vld [vmem:[%s1748_s2 + $0x2c8] sm:$0xff]  ;;  %v620_v6 = vld [vmem:[%s1748_s2 + $0x2d0] sm:$0xff] }
  0x73   :  { %v178_v13 = vmul.f32 %v177_v9, %v175_v3  ;;  %v185_v14 = vmul.f32 %v184_v10, %v175_v3  ;;  %693 = vmatpush.msrb.mxu1 %v579_v36  ;;  %v621_v9 = vld [vmem:[%s1748_s2 + $0x2d8] sm:$0xff]  ;;  %v606_v10 = vld [vmem:[%s1748_s2 + $0x260] sm:$0xff]  ;;  %v624_v36 = vld [vmem:[%s1748_s2 + $0x2f0] sm:$0xff] }
  0x75   :  { %v179_v15 = vadd.f32 -0.4999988, %v178_v13  ;;  %v186_v16 = vadd.f32 -0.16666654, %v185_v14  ;;  %694 = vmatpush.msrb.mxu1 %v567_v53  ;;  %v608_v13 = vld [vmem:[%s1748_s2 + $0x270] sm:$0xff]  ;;  %v609_v14 = vld [vmem:[%s1748_s2 + $0x278] sm:$0xff] }
  0x76   :  { %v1085_v53 = vmov 0.0  }
  0x77   :  { %v180_v20 = vmul.f32 %v179_v15, %v175_v3  ;;  %v187_v11 = vmul.f32 %v186_v16, %v175_v3  ;;  %695 = vmatpush.msrb.mxu1 %v555_v57  ;;  %v533_v3 = vld [vmem:[%s1748_s2 + $0x18] sm:$0xff]  ;;  %v594_v15 = vld [vmem:[%s1748_s2 + $0x200] sm:$0xff]  ;;  %v595_v16 = vld [vmem:[%s1748_s2 + $0x208] sm:$0xff] }
  0x78   :  { %737 = vmatpush.msrb.mxu3 %v533_v3  ;;  %v613_v57 = vld [vmem:[%s1748_s2 + $0x298] sm:$0xff]  ;;  %v574_v3 = vld [vmem:[%s1748_s2 + $0x160] sm:$0xff] }
  0x79   :  { %v181_v21 = vadd.f32 1.0, %v180_v20  ;;  %v188_v22 = vadd.f32 1.0, %v187_v11  ;;  %696 = vmatpush.msrb.mxu1 %v543_v61  ;;  %v600_v61 = vld [vmem:[%s1748_s2 + $0x230] sm:$0xff] }
  0x7b   :  { %v189_v23 = vmul.f32 %v188_v22, %v173_v2  ;;  %v197_v24 = vxor.u32 2147483648, %v181_v21  ;;  %v532_v2 = vld [vmem:[%s1748_s2 + $0x10] sm:$0xff]  ;;  %697 = vmatpush.msrb.mxu1 %v531_v1  ;;  %v583_v22 = vld [vmem:[%s1748_s2 + $0x1a8] sm:$0xff] }
  0x7c   :  { %717 = vmatpush.msrb.mxu2 %v532_v2  ;;  %v588_v1 = vld [vmem:[%s1748_s2 + $0x1d0] sm:$0xff]  ;;  %v589_v2 = vld [vmem:[%s1748_s2 + $0x1d8] sm:$0xff] }
  0x7d   :  { %v194_v25 = vxor.u32 2147483648, %v189_v23  ;;  %v353_v26 = vsel %vm351_vm15, %v197_v24, %v189_v23  ;;  %v198_v27 = vsel %vm196_vm0, %v197_v24, %v189_v23  ;;  %v584_v23 = vld [vmem:[%s1748_s2 + $0x1b0] sm:$0xff]  ;;  %v585_v24 = vld [vmem:[%s1748_s2 + $0x1b8] sm:$0xff]  ;;  %vm932_vm15 = vcmask 1046534  }
  0x7e   :  { %vm934_vm0 = vcmask 1045508  }
  0x7f   :  { %v350_v28 = vsel %vm348_vm2, %v181_v21, %v194_v25  ;;  %v195_v29 = vsel %vm193_vm3, %v181_v21, %v194_v25  ;;  %v582_v21 = vld [vmem:[%s1748_s2 + $0x1a0] sm:$0xff] }
  0x80   :  { %v354_v30 = vsel %vm347_vm1, %v350_v28, %v353_v26  ;;  %v199_v31 = vsel %vm192_vm4, %v195_v29, %v198_v27  ;;  %v570_v26 = vld [vmem:[%s1748_s2 + $0x140] sm:$0xff]  ;;  %v571_v27 = vld [vmem:[%s1748_s2 + $0x148] sm:$0xff]  ;;  %v572_v28 = vld [vmem:[%s1748_s2 + $0x150] sm:$0xff]  ;;  %vm936_vm1 = vcmask 1043456  }
  0x81   :  { %v355_v32 = vsel %vm190_vm5, nan, %v354_v30  ;;  %v200_v33 = vsel %vm190_vm5, nan, %v199_v31  ;;  %v573_v29 = vld [vmem:[%s1748_s2 + $0x158] sm:$0xff]  ;;  %v558_v30 = vld [vmem:[%s1748_s2 + $0xe0] sm:$0xff]  ;;  %v559_v31 = vld [vmem:[%s1748_s2 + $0xe8] sm:$0xff] }
  0x82   :  { %v362_v34 = vperm.slane %v355_v32, 0  ;;  %v363_v35 = vperm.slane %v355_v32, 1  ;;  %v357_v37 = vperm.slane %v200_v33, 0  ;;  %v358_v38 = vperm.slane %v200_v33, 1 }
  0x84   :  { %486 = vmatmul.f32.vlgmr.msra.gmra.mxu2 %v362_v34  ;;  %506 = vmatmul.f32.vlgmr.msra.gmra.mxu3 %v363_v35  ;;  %v560_v34 = vld [vmem:[%s1748_s2 + $0xf0] sm:$0xff]  ;;  %v561_v35 = vld [vmem:[%s1748_s2 + $0xf8] sm:$0xff] }
  0x85   :  { %446 = vmatmul.f32.vlgmr.msra.gmra.mxu0 %v357_v37  ;;  %466 = vmatmul.f32.vlgmr.msra.gmra.mxu1 %v358_v38 }
  0x86   :  { %750 = vmatpush.msra.mxu0 %v618_v4  ;;  %770 = vmatpush.msra.mxu1 %v619_v5  ;;  %v575_v4 = vld [vmem:[%s1748_s2 + $0x168] sm:$0xff]  ;;  %v576_v5 = vld [vmem:[%s1748_s2 + $0x170] sm:$0xff] }
  0x87   :  { %790 = vmatpush.msra.mxu2 %v620_v6  ;;  %810 = vmatpush.msra.mxu3 %v621_v9  ;;  %v577_v6 = vld [vmem:[%s1748_s2 + $0x178] sm:$0xff]  ;;  %v562_v9 = vld [vmem:[%s1748_s2 + $0x100] sm:$0xff] }
  0x88   :  { %751 = vmatpush.msra.mxu0 %v606_v10  ;;  %771 = vmatpush.msra.mxu1 %v607_v12  ;;  %v563_v10 = vld [vmem:[%s1748_s2 + $0x108] sm:$0xff]  ;;  %v564_v12 = vld [vmem:[%s1748_s2 + $0x110] sm:$0xff] }
  0x89   :  { %791 = vmatpush.msra.mxu2 %v608_v13  ;;  %811 = vmatpush.msra.mxu3 %v609_v14  ;;  %v565_v13 = vld [vmem:[%s1748_s2 + $0x118] sm:$0xff]  ;;  %v550_v14 = vld [vmem:[%s1748_s2 + $0xa0] sm:$0xff] }
  0x8a   :  { %752 = vmatpush.msra.mxu0 %v594_v15  ;;  %772 = vmatpush.msra.mxu1 %v595_v16  ;;  %v551_v15 = vld [vmem:[%s1748_s2 + $0xa8] sm:$0xff]  ;;  %v552_v16 = vld [vmem:[%s1748_s2 + $0xb0] sm:$0xff] }
  0x8b   :  { %792 = vmatpush.msra.mxu2 %v596_v17  ;;  %812 = vmatpush.msra.mxu3 %v597_v19  ;;  %v553_v17 = vld [vmem:[%s1748_s2 + $0xb8] sm:$0xff]  ;;  %v538_v19 = vld [vmem:[%s1748_s2 + $0x40] sm:$0xff] }
  0x8c   :  { %753 = vmatpush.msra.mxu0 %v582_v21  ;;  %773 = vmatpush.msra.mxu1 %v583_v22  ;;  %v541_v21 = vld [vmem:[%s1748_s2 + $0x58] sm:$0xff] }
  0x8d   :  { %793 = vmatpush.msra.mxu2 %v584_v23  ;;  %813 = vmatpush.msra.mxu3 %v585_v24  ;;  %v41_v24 = vlaneseq }
  0x8e   :  { %754 = vmatpush.msra.mxu0 %v570_v26  ;;  %774 = vmatpush.msra.mxu1 %v571_v27  ;;  %v627_v27 = vld [vmem:[%s1749_s3] sm:$0xff] }
  0x8f   :  { %794 = vmatpush.msra.mxu2 %v572_v28  ;;  %814 = vmatpush.msra.mxu3 %v573_v29  ;;  %vm43_vm10 = vcmp.lt.s32.totalorder %v41_v24, 256  ;;  %v629_v28 = vstv %s1750_s4  ;;  %vm944_vm2 = vcmp.lt.s32.totalorder %v41_v24, 512 }
  0x90   :  { %755 = vmatpush.msra.mxu0 %v558_v30  ;;  %775 = vmatpush.msra.mxu1 %v559_v31  ;;  %45 = vst.msk [vmem:[%s1754_s8] sm:$0x3] %vm43_vm10, %v1325_v7  ;;  %v630_v29 = vmul.f32 %v629_v28, %v627_v27 }
  0x91   :  { %795 = vmatpush.msra.mxu2 %v560_v34  ;;  %815 = vmatpush.msra.mxu3 %v561_v35 }
  0x92   :  { %756 = vmatpush.msra.mxu0 %v546_v8  ;;  %776 = vmatpush.msra.mxu1 %v547_v40  ;;  %v635_v34 = vperm.slane %v630_v29, 1  ;;  %v638_v35 = vperm.slane %v630_v29, 4  ;;  %v628_v40 = vld [vmem:[%s1749_s3 + $0x8] sm:$0xf] }
  0x93   :  { %796 = vmatpush.msra.mxu2 %v548_v41  ;;  %816 = vmatpush.msra.mxu3 %v549_v42 }
  0x94   :  { %757 = vmatpush.msra.mxu0 %v534_v43  ;;  %777 = vmatpush.msra.mxu1 %v535_v44  ;;  %v640_v44 = vperm.slane %v630_v29, 6 }
  0x95   :  { %797 = vmatpush.msra.mxu2 %v536_v45  ;;  %817 = vmatpush.msra.mxu3 %v537_v18  ;;  %v641_v45 = vperm.slane %v630_v29, 7  ;;  %v631_v18 = vmul.f32 %v629_v28, %v628_v40 }
 0x102   :  { %v447_v20 = vpop.f32.mrf.mxu0  ;;  %v467_v11 = vpop.f32.mrf.mxu1 }
 0x103   :  { %v468_v25 = vadd.f32 %v467_v11, %v447_v20  ;;  %v539_v20 = vld [vmem:[%s1748_s2 + $0x48] sm:$0xff]  ;;  %v540_v11 = vld [vmem:[%s1748_s2 + $0x50] sm:$0xff]  ;;  %s954_s2 = sshll.u32 %s1086_s18, 4  ;;  %s955_s2 = int_to_ptr.vmem [resolvable:$true] %s954_s2 }
 0x107   :  { %v487_v32 = vpop.f32.mrf.mxu2  ;;  %v507_v33 = vpop.f32.mrf.mxu3 }
 0x108   :  { %v488_v37 = vadd.f32 %v487_v32, %v468_v25  ;;  %v636_v32 = vperm.slane %v630_v29, 2 }
 0x10a   :  { %v508_v38 = vadd.f32 %v507_v33, %v488_v37  ;;  %v637_v33 = vperm.slane %v630_v29, 3  ;;  %v639_v37 = vperm.slane %v630_v29, 5 }
 0x10c   :  { %v510_v39 = vmul.f32 %v508_v38, %v508_v38 }
 0x10e   :  { %512 = vrot.lane.b32.xlu0 %v510_v39, %s1084_s29 }
 0x180   :  { %v513_v46 = vpop.permute.xlu0 %512 }
 0x181   :  { %v1581_v47 = vadd.f32 %v513_v46, %v510_v39  ;;  %v634_v46 = vperm.slane %v630_v29, 0 }
 0x183   :  { %998 = vmatmul.msk.f32.vlgmr.msrb.gmra.mxu0 %vm658_vm6, %v1581_v47  ;;  %999 = vmatmul.msk.f32.vlgmr.msrb.gmra.mxu1 %vm658_vm6, %v1581_v47  ;;  %517 = vst.msk [vmem:[%s1751_s5] sm:$0x1] %vm516_vm7, %v1581_v47  ;;  %vm523_vm8 = vcmp.ne.f32.partialorder %v1581_v47, %v1581_v47  ;;  %v518_v51 = vsel %vm516_vm7, %v1581_v47, 0.0 }
 0x184   :  { %1000 = vmatmul.msk.f32.vlgmr.msrb.gmra.mxu2 %vm658_vm6, %v1581_v47  ;;  %1001 = vmatmul.msk.f32.vlgmr.msrb.gmra.mxu3 %vm658_vm6, %v1581_v47  ;;  %v997_v54 = vsel %vm523_vm8, 1.0, %v1085_v53 }
 0x185   :  { %830 = vmatpush.msrb.mxu0 %v622_v48  ;;  %850 = vmatpush.msrb.mxu1 %v623_v49  ;;  %v526_v58 = vsel %vm516_vm7, %v997_v54, -inf }
 0x186   :  { %870 = vmatpush.msrb.mxu2 %v624_v36  ;;  %890 = vmatpush.msrb.mxu3 %v625_v50 }
 0x187   :  { %519 = vadd.xlane.f32.xlu0 %v518_v51  ;;  %831 = vmatpush.msrb.mxu0 %v610_v52 }
 0x188   :  { %851 = vmatpush.msrb.mxu1 %v611_v55  ;;  %871 = vmatpush.msrb.mxu2 %v612_v56  ;;  %v643_v55 = vperm.slane %v631_v18, 1 }
 0x189   :  { %891 = vmatpush.msrb.mxu3 %v613_v57  ;;  %527 = vmax.xlane.f32.xlu1 %v526_v58 }
 0x18a   :  { %832 = vmatpush.msrb.mxu0 %v598_v59  ;;  %852 = vmatpush.msrb.mxu1 %v599_v60 }
 0x18b   :  { %872 = vmatpush.msrb.mxu2 %v600_v61  ;;  %892 = vmatpush.msrb.mxu3 %v601_v62 }
 0x18c   :  { %833 = vmatpush.msrb.mxu0 %v586_v63  ;;  %853 = vmatpush.msrb.mxu1 %v587_v0 }
 0x18d   :  { %873 = vmatpush.msrb.mxu2 %v588_v1  ;;  %893 = vmatpush.msrb.mxu3 %v589_v2 }
 0x18e   :  { %1002 = vmatmul.msk.f32.vlgmr.msra.gmra.mxu0 %vm658_vm6, %v1581_v47  ;;  %1003 = vmatmul.msk.f32.vlgmr.msra.gmra.mxu1 %vm658_vm6, %v1581_v47 }
 0x18f   :  { %1004 = vmatmul.msk.f32.vlgmr.msra.gmra.mxu2 %vm658_vm6, %v1581_v47  ;;  %1005 = vmatmul.msk.f32.vlgmr.msra.gmra.mxu3 %vm658_vm6, %v1581_v47 }
 0x190   :  { %834 = vmatpush.msrb.mxu0 %v574_v3  ;;  %854 = vmatpush.msrb.mxu1 %v575_v4  ;;  %v644_v4 = vperm.slane %v631_v18, 2 }
 0x191   :  { %874 = vmatpush.msrb.mxu2 %v576_v5  ;;  %894 = vmatpush.msrb.mxu3 %v577_v6  ;;  %v645_v5 = vperm.slane %v631_v18, 3  ;;  %v642_v6 = vperm.slane %v631_v18, 0 }
 0x192   :  { %835 = vmatpush.msrb.mxu0 %v562_v9  ;;  %855 = vmatpush.msrb.mxu1 %v563_v10 }
 0x193   :  { %875 = vmatpush.msrb.mxu2 %v564_v12  ;;  %895 = vmatpush.msrb.mxu3 %v565_v13 }
 0x194   :  { %836 = vmatpush.msrb.mxu0 %v550_v14  ;;  %856 = vmatpush.msrb.mxu1 %v551_v15 }
 0x195   :  { %876 = vmatpush.msrb.mxu2 %v552_v16  ;;  %896 = vmatpush.msrb.mxu3 %v553_v17 }
 0x196   :  { %837 = vmatpush.msrb.mxu0 %v538_v19  ;;  %857 = vmatpush.msrb.mxu1 %v539_v20 }
 0x197   :  { %877 = vmatpush.msrb.mxu2 %v540_v11  ;;  %897 = vmatpush.msrb.mxu3 %v541_v21 }
 0x198   :  { %1006 = vmatmul.msk.f32.vlgmr.msrb.gmra.mxu0 %vm658_vm6, %v1581_v47  ;;  %1007 = vmatmul.msk.f32.vlgmr.msrb.gmra.mxu1 %vm658_vm6, %v1581_v47 }
 0x199   :  { %1008 = vmatmul.msk.f32.vlgmr.msrb.gmra.mxu2 %vm658_vm6, %v1581_v47  ;;  %1009 = vmatmul.msk.f32.vlgmr.msrb.gmra.mxu3 %vm658_vm6, %v1581_v47 }
 0x1fa   :  { %v520_v22 = vpop.xlane.xlu0 %519 }
 0x1fb   :  { %522 = vst.msk [vmem:[#allocation3] sm:$0x1] %vm521_vm9, %v520_v22 }
 0x1fc   :  { %v528_v23 = vpop.xlane.xlu1 %527  ;;  %959 = dma.vmem_to_hbm [thread:$0]  %s955_s2, 16, %s957_s20, [#allocation4]  }
 0x1fd   :  { %529 = vst.msk [vmem:[#allocation5] sm:$0x1] %vm521_vm9, %v528_v23 }
 0x1fe   :  { %970 = dma.vmem_to_hbm [thread:$0]  %s966_s22, 16, %s968_s25, [#allocation6]  }
 0x200   :  { %v679_v25 = vpop.f32.mrf.mxu0  ;;  %v699_v26 = vpop.f32.mrf.mxu1 }
 0x201   :  { %v700_v41 = vadd.f32 %v699_v26, %v635_v34  ;;  %v680_v56 = vadd.f32 %v679_v25, %v634_v46 }
 0x203   :  { %v914_v49 = vrot.slane %v700_v41, 7 }
 0x205   :  { %v925_v61 = vsel %vm924_vm11, %v680_v56, %v914_v49 }
 0x207   :  { %v719_v30 = vpop.f32.mrf.mxu2  ;;  %v739_v31 = vpop.f32.mrf.mxu3 }
 0x208   :  { %v720_v8 = vadd.f32 %v719_v30, %v636_v32  ;;  %v740_v7 = vadd.f32 %v739_v31, %v637_v33 }
 0x20a   :  { %v915_v47 = vrot.slane %v720_v8, 6  ;;  %v916_v48 = vrot.slane %v740_v7, 5 }
 0x20b   :  { %v759_v38 = vpop.f32.mrf.mxu0  ;;  %v779_v39 = vpop.f32.mrf.mxu1 }
 0x20c   :  { %v760_v42 = vadd.f32 %v759_v38, %v638_v35  ;;  %v780_v43 = vadd.f32 %v779_v39, %v639_v37  ;;  %v927_v57 = vsel %vm926_vm12, %v915_v47, %v916_v48 }
 0x20d   :  { %v929_v0 = vsel %vm928_vm13, %v925_v61, %v927_v57 }
 0x20e   :  { %v917_v51 = vrot.slane %v760_v42, 4  ;;  %v918_v52 = vrot.slane %v780_v43, 3 }
 0x210   :  { %v931_v62 = vsel %vm930_vm14, %v917_v51, %v918_v52 }
 0x212   :  { %v799_v36 = vpop.f32.mrf.mxu2  ;;  %v819_v50 = vpop.f32.mrf.mxu3 }
 0x213   :  { %v800_v53 = vadd.f32 %v799_v36, %v640_v44  ;;  %v820_v54 = vadd.f32 %v819_v50, %v641_v45 }
 0x215   :  { %v919_v58 = vrot.slane %v800_v53, 2  ;;  %v920_v59 = vrot.slane %v820_v54, 1  ;;  %v859_v60 = vpop.f32.mrf.mxu1  ;;  %v839_v9 = vpop.f32.mrf.mxu0 }
 0x216   :  { %v860_v3 = vadd.f32 %v859_v60, %v643_v55  ;;  %v840_v16 = vadd.f32 %v839_v9, %v642_v6 }
 0x217   :  { %v933_v63 = vsel %vm932_vm15, %v919_v58, %v920_v59 }
 0x218   :  { %v935_v1 = vsel %vm934_vm0, %v931_v62, %v933_v63  ;;  %v921_v13 = vrot.slane %v860_v3, 7 }
 0x219   :  { %v937_v2 = vsel %vm936_vm1, %v929_v0, %v935_v1 }
 0x21a   :  { %943 = vst [vmem:[%s1755_s9] sm:$0xff] %v937_v2  ;;  %v938_v20 = vsel %vm924_vm11, %v840_v16, %v921_v13 }
 0x21c   :  { %v879_v10 = vpop.f32.mrf.mxu2  ;;  %v899_v12 = vpop.f32.mrf.mxu3 }
 0x21d   :  { %v880_v14 = vadd.f32 %v879_v10, %v644_v4  ;;  %v900_v15 = vadd.f32 %v899_v12, %v645_v5 }
 0x21f   :  { %v922_v17 = vrot.slane %v880_v14, 6  ;;  %v923_v19 = vrot.slane %v900_v15, 5 }
 0x221   :  { %v939_v11 = vsel %vm926_vm12, %v922_v17, %v923_v19 }
 0x222   :  { %v940_v21 = vsel %vm928_vm13, %v938_v20, %v939_v11 }
 0x223   :  { %946 = vst.msk [vmem:[%s1755_s9 + $0x8] sm:$0xf] %vm944_vm2, %v940_v21 }
 0x224   :  { %1072 = dma.done.wait [#allocation4], 16  }
 0x225   :  { %1073 = vsyncadd [#allocation4], 4294967280 }
 0x226   :  { %1074 = dma.done.wait [#allocation6], 16  }
 0x227   :  { %1075 = vsyncadd [#allocation6], 4294967280 }
 0x228   :  { %989 = vsyncpa [#allocation4], 1 }
 0x229   :  { %990 = vsyncpa [#allocation6], 1 }

</bundles_post_ra>
